<compile_context>
chip_gen: v6e
topology: v6e:2x2x1
jax: 0.10.0
libtpu: 0.0.40
codegen_flags: <defaults>
</compile_context>

<pallas_src>
import jax
import jax.numpy as jnp
from jax.experimental import pallas as pl
from jax.experimental.pallas import tpu as pltpu


def attention_kernel(hid_ref, enc_ref, w_ref, bv_ref, out_ref):
    # hid_ref : (B, Hd)
    # enc_ref : (S*B, E2)    row r = s*B + b   (seq-major flatten, free)
    # w_ref   : (Hd+E2, Hd)  pre-transposed nn.Linear(attn) weight
    # bv_ref  : (2, Hd)      row 0 = attn bias, row 1 = v weight
    # out_ref : (S*B, 1)     row r holds softmax prob for (s, b) with r = s*B + b
    B, Hd = hid_ref.shape
    SB, _ = enc_ref.shape
    S = SB // B

    bias = bv_ref[0:1, :]                                               # (1, Hd)
    v = bv_ref[1:2, :]                                                  # (1, Hd)

    # Hidden projection hoisted: one (B,Hd)@(Hd,Hd) matmul + bias.
    hp = jnp.dot(hid_ref[...], w_ref[0:Hd, :],
                 preferred_element_type=jnp.float32) + bias             # (B, Hd)
    # Seq-major row r = s*B + b -> hp[b]; the (B,Hd) block simply repeats S times.
    hp_rep = jnp.tile(hp, (S, 1))                                       # (SB, Hd)

    # Encoder projection: single matmul over all S*B rows.
    ep = jnp.dot(enc_ref[...], w_ref[Hd:, :],
                 preferred_element_type=jnp.float32)                    # (SB, Hd)

    energy = jnp.tanh(ep + hp_rep)                                      # (SB, Hd)

    # Attention logits: VPU broadcast-multiply + lane reduction (no N=1 matmul).
    t = jnp.sum(energy * v, axis=-1, keepdims=True)                     # (SB, 1)

    # Per-batch softmax over S (groups interleave with stride B), done fully
    # in-vreg with an iota membership mask — no one-hot matmuls, no extra DMAs.
    row = jax.lax.broadcasted_iota(jnp.int32, (SB, B), 0)
    col = jax.lax.broadcasted_iota(jnp.int32, (SB, B), 1)
    mask = (row % B) == col                                             # (SB, B)
    masked = jnp.where(mask, t, -1e30)                                  # off-group -> -1e30
    m = jnp.max(masked, axis=0, keepdims=True)                          # (1, B) per-batch max
    e = jnp.exp(masked - m)                                             # 0 off-group
    denom = jnp.sum(e, axis=0, keepdims=True)                           # (1, B)
    p = e * pl.reciprocal(denom, approx=False)                          # (SB, B)
    # Each row keeps exactly its own group's probability (others are 0).
    out_ref[...] = jnp.sum(p, axis=1, keepdims=True)                    # (SB, 1)


def prepare_attention_params(params):
    """One-time parameter packing (transpose ONCE, outside the per-step call)."""
    W = jnp.asarray(params["attn_w"])          # (Hd, Hd + E2)  nn.Linear(attn) weight
    b = jnp.asarray(params["attn_b"])          # (Hd,)
    Wv = jnp.asarray(params["v_w"])            # (1, Hd)        nn.Linear(v) weight
    w_packed = W.T                             # (Hd + E2, Hd): [hidden rows | enc rows]
    bv = jnp.stack([b, Wv.reshape(-1)], axis=0).astype(jnp.float32)   # (2, Hd)
    return {"w_packed": w_packed.astype(jnp.float32), "bv": bv}


def attention_forward(hidden, encoder_outputs, prepared):
    """hidden: (B, Hd); encoder_outputs: (S, B, 2*He). Returns (S, B), softmax over S."""
    S, B, E2 = encoder_outputs.shape
    Hd = hidden.shape[1]
    SB = S * B

    # Free contiguous flatten of the seq-major encoder tensor (no HBM transpose).
    enc2d = encoder_outputs.reshape(SB, E2)

    vmem = lambda: pl.BlockSpec(memory_space=pltpu.MemorySpace.VMEM)

    out_col = pl.pallas_call(
        attention_kernel,
        out_shape=jax.ShapeDtypeStruct((SB, 1), jnp.float32),
        in_specs=[vmem(), vmem(), vmem(), vmem()],
        out_specs=vmem(),
    )(hidden.astype(jnp.float32), enc2d.astype(jnp.float32),
      prepared["w_packed"], prepared["bv"])

    # Row r = s*B + b  ->  free reshape back to (S, B).
    return out_col.reshape(S, B)


if __name__ == "__main__":
    enc_hid_dim, dec_hid_dim = 16, 32
    src_len, batch = 8, 2
    in_f = enc_hid_dim * 2 + dec_hid_dim

    key = jax.random.PRNGKey(0)
    k1, k2, k3, k4, k5 = jax.random.split(key, 5)

    # Deterministic init mimicking nn.Linear's uniform(-1/sqrt(fan_in), 1/sqrt(fan_in))
    b1 = in_f ** -0.5
    b2 = dec_hid_dim ** -0.5
    params = {
        "attn_w": jax.random.uniform(k1, (dec_hid_dim, in_f), jnp.float32, -b1, b1),
        "attn_b": jax.random.uniform(k2, (dec_hid_dim,), jnp.float32, -b1, b1),
        "v_w": jax.random.uniform(k3, (1, dec_hid_dim), jnp.float32, -b2, b2),
    }

    hidden = jax.random.normal(k4, (batch, dec_hid_dim), jnp.float32)
    encoder_outputs = jax.random.normal(k5, (src_len, batch, 2 * enc_hid_dim), jnp.float32)

    prepared = prepare_attention_params(params)          # packed/transposed ONCE
    out = attention_forward(hidden, encoder_outputs, prepared)
    out = jax.block_until_ready(out)

    # Pure-JAX reference of the PyTorch forward pass
    hid_rep = jnp.broadcast_to(hidden[None], (src_len, batch, dec_hid_dim))
    x = jnp.concatenate([hid_rep, encoder_outputs], axis=2)
    energy = jnp.tanh(x @ params["attn_w"].T + params["attn_b"])
    logits = (energy @ params["v_w"].T)[..., 0]
    ref = jax.nn.softmax(logits, axis=0)

    assert out.shape == (src_len, batch)
    assert jnp.allclose(out, ref, atol=1e-5, rtol=1e-5)
    print("KERNEL_OK")
</pallas_src>

<mosaic_0001>
module attributes {stable_mosaic.version = 11 : i64} {
  func.func @attention_kernel(%arg0: memref<2x32xf32, #tpu.memory_space<vmem>>, %arg1: memref<16x32xf32, #tpu.memory_space<vmem>>, %arg2: memref<64x32xf32, #tpu.memory_space<vmem>>, %arg3: memref<2x32xf32, #tpu.memory_space<vmem>>, %arg4: memref<16x1xf32, #tpu.memory_space<vmem>>) attributes {dimension_semantics = [], scalar_prefetch = 0 : i64, scratch_operands = 0 : i64, tpu.core_type = #tpu.core_type<tc>} {
    %c0 = arith.constant 0 : index
    %c0_0 = arith.constant 0 : index
    %0 = vector.load %arg3[%c0, %c0_0] : memref<2x32xf32, #tpu.memory_space<vmem>>, vector<1x32xf32>
    %c1 = arith.constant 1 : index
    %c0_1 = arith.constant 0 : index
    %1 = vector.load %arg3[%c1, %c0_1] : memref<2x32xf32, #tpu.memory_space<vmem>>, vector<1x32xf32>
    %c0_2 = arith.constant 0 : index
    %c0_3 = arith.constant 0 : index
    %2 = vector.load %arg0[%c0_2, %c0_3] : memref<2x32xf32, #tpu.memory_space<vmem>>, vector<2x32xf32>
    %c0_4 = arith.constant 0 : index
    %c0_5 = arith.constant 0 : index
    %3 = vector.load %arg2[%c0_4, %c0_5] : memref<64x32xf32, #tpu.memory_space<vmem>>, vector<32x32xf32>
    %cst = arith.constant dense<0.000000e+00> : vector<2x32xf32>
    %4 = tpu.matmul %2, %3, %cst {dimension_numbers = #tpu.dot_dimension_numbers<[1], [0], [0], [1], [0, 0, 1, 1], [], []>} : vector<2x32xf32>, vector<32x32xf32>, vector<2x32xf32> -> vector<2x32xf32>
    %5 = vector.broadcast %0 : vector<1x32xf32> to vector<2x32xf32>
    %6 = arith.addf %4, %5 : vector<2x32xf32>
    %7 = tpu.concatenate %6, %6, %6, %6, %6, %6, %6, %6 in 0 : vector<2x32xf32>, vector<2x32xf32>, vector<2x32xf32>, vector<2x32xf32>, vector<2x32xf32>, vector<2x32xf32>, vector<2x32xf32>, vector<2x32xf32> -> vector<16x32xf32>
    %c0_6 = arith.constant 0 : index
    %c0_7 = arith.constant 0 : index
    %8 = vector.load %arg1[%c0_6, %c0_7] : memref<16x32xf32, #tpu.memory_space<vmem>>, vector<16x32xf32>
    %c32 = arith.constant 32 : index
    %c0_8 = arith.constant 0 : index
    %9 = vector.load %arg2[%c32, %c0_8] : memref<64x32xf32, #tpu.memory_space<vmem>>, vector<32x32xf32>
    %cst_9 = arith.constant dense<0.000000e+00> : vector<16x32xf32>
    %10 = tpu.matmul %8, %9, %cst_9 {dimension_numbers = #tpu.dot_dimension_numbers<[1], [0], [0], [1], [0, 0, 1, 1], [], []>} : vector<16x32xf32>, vector<32x32xf32>, vector<16x32xf32> -> vector<16x32xf32>
    %11 = arith.addf %10, %7 : vector<16x32xf32>
    %12 = math.tanh %11 : vector<16x32xf32>
    %13 = vector.broadcast %1 : vector<1x32xf32> to vector<16x32xf32>
    %14 = arith.mulf %12, %13 : vector<16x32xf32>
    %cst_10 = arith.constant dense<0.000000e+00> : vector<16xf32>
    %15 = vector.multi_reduction <add>, %14, %cst_10 [1] : vector<16x32xf32> to vector<16xf32>
    %16 = vector.shape_cast %15 : vector<16xf32> to vector<16x1xf32>
    %17 = tpu.iota {dimensions = array<i32: 0>} : vector<16x2xi32>
    %18 = tpu.iota {dimensions = array<i32: 1>} : vector<16x2xi32>
    %c2_i32 = arith.constant 2 : i32
    %c0_i32 = arith.constant 0 : i32
    %19 = arith.cmpi eq, %c2_i32, %c0_i32 : i32
    %c1_i32 = arith.constant 1 : i32
    %20 = arith.select %19, %c1_i32, %c2_i32 : i32
    %21 = vector.broadcast %20 : i32 to vector<16x2xi32>
    %22 = arith.remsi %17, %21 : vector<16x2xi32>
    %c0_i32_11 = arith.constant 0 : i32
    %23 = vector.broadcast %c0_i32_11 : i32 to vector<16x2xi32>
    %24 = arith.cmpi ne, %22, %23 : vector<16x2xi32>
    %c0_i32_12 = arith.constant 0 : i32
    %25 = vector.broadcast %c0_i32_12 : i32 to vector<16x2xi32>
    %26 = arith.cmpi slt, %22, %25 : vector<16x2xi32>
    %c0_i32_13 = arith.constant 0 : i32
    %27 = arith.cmpi slt, %20, %c0_i32_13 : i32
    %28 = vector.broadcast %27 : i1 to vector<16x2xi1>
    %29 = vector.broadcast %28 : vector<16x2xi1> to vector<16x2xi1>
    %30 = arith.xori %26, %29 : vector<16x2xi1>
    %31 = arith.andi %30, %24 : vector<16x2xi1>
    %32 = vector.broadcast %20 : i32 to vector<16x2xi32>
    %33 = arith.addi %22, %32 : vector<16x2xi32>
    %34 = arith.select %31, %33, %22 : vector<16x2xi1>, vector<16x2xi32>
    %35 = arith.cmpi eq, %34, %18 : vector<16x2xi32>
    %cst_14 = arith.constant -1.000000e+30 : f32
    %36 = vector.shape_cast %16 : vector<16x1xf32> to vector<16x1xf32>
    %37 = vector.broadcast %36 : vector<16x1xf32> to vector<16x2xf32>
    %38 = vector.broadcast %cst_14 : f32 to vector<16x2xf32>
    %39 = arith.select %35, %37, %38 : vector<16x2xi1>, vector<16x2xf32>
    %cst_15 = arith.constant dense<0xFF800000> : vector<2xf32>
    %40 = vector.multi_reduction <maximumf>, %39, %cst_15 [0] : vector<16x2xf32> to vector<2xf32>
    %41 = vector.shape_cast %40 : vector<2xf32> to vector<1x2xf32>
    %42 = vector.broadcast %41 : vector<1x2xf32> to vector<16x2xf32>
    %43 = arith.subf %39, %42 : vector<16x2xf32>
    %44 = math.exp %43 : vector<16x2xf32>
    %cst_16 = arith.constant dense<0.000000e+00> : vector<2xf32>
    %45 = vector.multi_reduction <add>, %44, %cst_16 [0] : vector<16x2xf32> to vector<2xf32>
    %46 = vector.shape_cast %45 : vector<2xf32> to vector<1x2xf32>
    %47 = tpu.reciprocal %46 : vector<1x2xf32> -> vector<1x2xf32>
    %48 = vector.broadcast %47 : vector<1x2xf32> to vector<16x2xf32>
    %49 = arith.mulf %44, %48 : vector<16x2xf32>
    %cst_17 = arith.constant dense<0.000000e+00> : vector<16xf32>
    %50 = vector.multi_reduction <add>, %49, %cst_17 [1] : vector<16x2xf32> to vector<16xf32>
    %51 = vector.shape_cast %50 : vector<16xf32> to vector<16x1xf32>
    %c0_18 = arith.constant 0 : index
    %c0_19 = arith.constant 0 : index
    %52 = vector.load %arg4[%c0_18, %c0_19] : memref<16x1xf32, #tpu.memory_space<vmem>>, vector<16x1xf32>
    tpu.vector_store %arg4[%c0_18, %c0_19], %51 {strides = array<i32>} : memref<16x1xf32, #tpu.memory_space<vmem>>, vector<16x1xf32>,
    return
  }
}

</mosaic_0001>

<bundles_post_ra>
// kernel: tpu_custom_call.1
= control target key start
LH: loop header
LB: loop body
LE: loop exit
PB: predicated region body
PF: predicated region fallthrough
CT: control target
= control target key end

     0   :  { %v340_v0 = vmov 0.0   ;;  %vm341_vm0 = vmmov 0   ;;  %vm28_vm1 = vcmask 261120   ;;  %vm109_vm2 = vcmask 1041408   ;;  %s423_s2 = inlined_call_operand.vmem [shape: f32[64,32], index: 2, kind: input, shape index: {}]   ;;  %s424_s0 = inlined_call_operand.vmem [shape: f32[2,32], index: 0, kind: input, shape index: {}]   ;;  %s425_s1 = inlined_call_operand.vmem [shape: f32[16,32], index: 1, kind: input, shape index: {}]   ;;  %s426_s3 = inlined_call_operand.vmem [shape: f32[2,32], index: 3, kind: input, shape index: {}]   ;;  %s427_s4 = inlined_call_operand.vmem [shape: f32[16,1], index: 4, kind: output, shape index: {}]  }
   0x1   :  { %306 = vmatprep.subr.mxu0 %v340_v0  ;;  %v23_v1 = vld [vmem:[%s423_s2 + $0x18] sm:$0xff]  ;;  %v22_v2 = vld [vmem:[%s423_s2 + $0x10] sm:$0xff]  ;;  %314 = vmatprep.mubr.msk.f32.mxu0 %vm341_vm0, %v340_v0  ;;  %v21_v5 = vld [vmem:[%s423_s2 + $0x8] sm:$0xff]  ;;  %vm111_vm3 = vcmask 1043456   ;;  %vm113_vm4 = vcmask 1045504   ;;  %v216_v33 = vlaneseq  ;;  %vm249_vm7 = vcmask 15360  }
   0x2   :  { %v120_v3 = vld [vmem:[%s423_s2 + $0x38] sm:$0xff]  ;;  %307 = vmatpush3.msra.mxu0 %v23_v1  ;;  %v119_v4 = vld [vmem:[%s423_s2 + $0x30] sm:$0xff]  ;;  %v118_v6 = vld [vmem:[%s423_s2 + $0x28] sm:$0xff]  ;;  %vm283_vm8 = vcmask 7168  }
   0x3   :  { %317 = vmatprep.subr.mxu1 %v120_v3  ;;  %308 = vmatprep.subr.mxu0 %v340_v0  ;;  %v20_v7 = vld [vmem:[%s423_s2] sm:$0xff]  ;;  %v116_v11 = vld [vmem:[%s425_s1 + $0x8] sm:$0xff]  ;;  %v217_v34 = vshrl.u32 %v216_v33, 7  ;;  %v220_v36 = vand.u32 127, %v216_v33 }
   0x4   :  { %318 = vmatpush3.msra.mxu1 %v120_v3  ;;  %309 = vmatpush3.msra.mxu0 %v22_v2  ;;  %v117_v8 = vld [vmem:[%s423_s2 + $0x20] sm:$0xff] }
   0x5   :  { %319 = vmatprep.subr.mxu1 %v119_v4  ;;  %310 = vmatprep.subr.mxu0 %v340_v0  ;;  %v19_v9 = vld [vmem:[%s424_s0] sm:$0x3]  ;;  %v218_v35 = vadd.s32 8, %v217_v34  ;;  %v225_v37 = vand.u32 1, %v217_v34 }
   0x6   :  { %320 = vmatpush3.msra.mxu1 %v119_v4  ;;  %311 = vmatpush3.msra.mxu0 %v21_v5  ;;  %v115_v10 = vld [vmem:[%s425_s1] sm:$0xff] }
   0x7   :  { %321 = vmatprep.subr.mxu1 %v118_v6  ;;  %312 = vmatprep.subr.mxu0 %v340_v0  ;;  %v290_v12 = vld [vmem:[%s426_s3] ss:$0 sm:$0xff]  ;;  %v294_v26 = vld [vmem:[%s426_s3 + $0x1] ss:$0 sm:$0xff]  ;;  %v232_v38 = vand.u32 1, %v218_v35  ;;  %vm245_vm5 = vcmp.eq.s32.totalorder %v225_v37, %v220_v36 }
   0x8   :  { %322 = vmatpush3.msra.mxu1 %v118_v6  ;;  %313 = vmatpush3.msra.mxu0 %v20_v7 }
   0x9   :  { %323 = vmatprep.subr.mxu1 %v117_v8  ;;  %315 = vmatmul.mubr.msk.f32.vlgmr.msra.gmra.mxu0 %vm28_vm1, %v19_v9  ;;  %vm246_vm6 = vcmp.eq.s32.totalorder %v232_v38, %v220_v36 }
   0xa   :  { %324 = vmatpush3.msra.mxu1 %v117_v8  ;;  %325 = vmatprep.mubr.msk.f32.mxu1 %vm28_vm1, %v115_v10 }
   0xb   :  { %326 = vmatmul.mubr.msk.f32.vlgmr.msra.gmra.mxu1 %vm28_vm1, %v116_v11 }
  0xc9   :  { %v98_v13 = vpop.f32.mrf.mxu0 }
  0xca   :  { %v99_v14 = vadd.f32 %v290_v12, %v98_v13 }
  0xcb   :  { %v316_v15 = vpop.f32.mrf.mxu0  ;;  %v327_v18 = vpop.f32.mrf.mxu1 }
  0xcc   :  { %v103_v16 = vrot.slane %v99_v14, 6  ;;  %v105_v17 = vrot.slane %v99_v14, 4  ;;  %v107_v19 = vrot.slane %v99_v14, 2 }
  0xcd   :  { %v193_v23 = vpop.f32.mrf.mxu1 }
  0xce   :  { %v110_v20 = vsel %vm109_vm2, %v99_v14, %v103_v16 }
  0xcf   :  { %v112_v21 = vsel %vm111_vm3, %v110_v20, %v105_v17 }
  0xd0   :  { %v114_v22 = vsel %vm113_vm4, %v112_v21, %v107_v19 }
  0xd1   :  { %v199_v24 = vadd.f32 %v327_v18, %v114_v22  ;;  %v194_v25 = vadd.f32 %v193_v23, %v114_v22 }
  0xd3   :  { %330 = vtanh.f32 %v199_v24 }
  0xd4   :  { %332 = vtanh.f32 %v194_v25 }
  0xe0   :  { %v331_v27 = vpop.eup %330 }
  0xe1   :  { %v333_v28 = vpop.eup %332  ;;  %v209_v31 = vmul.f32 %v331_v27, %v294_v26 }
  0xe2   :  { %v208_v29 = vmul.f32 %v333_v28, %v294_v26 }
  0xe3   :  { %v213_v32 = vsel %vm28_vm1, %v209_v31, 0.0 }
  0xe4   :  { %v210_v30 = vsel %vm28_vm1, %v208_v29, 0.0 }
  0xe5   :  { %211 = vadd.xlane.f32.xlu0 %v210_v30 }
  0xe9   :  { %214 = vadd.xlane.f32.xlu0 %v213_v32 }
 0x16e   :  { %v212_v39 = vpop.xlane.xlu0 %211 }
 0x16f   :  { %v247_v40 = vsel %vm245_vm5, %v212_v39, -1e+30 }
 0x170   :  { %v250_v43 = vsel %vm249_vm7, %v247_v40, -inf }
 0x172   :  { %v215_v41 = vpop.xlane.xlu0 %214 }
 0x173   :  { %v248_v42 = vsel %vm246_vm6, %v215_v41, -1e+30 }
 0x174   :  { %v251_v44 = vsel %vm249_vm7, %v248_v42, -inf }
 0x175   :  { %v252_v45 = vmax.f32 %v250_v43, %v251_v44 }
 0x177   :  { %v253_v46 = vrot.slane %v252_v45, 4 }
 0x179   :  { %v254_v47 = vmax.f32 %v252_v45, %v253_v46 }
 0x17b   :  { %v255_v48 = vrot.slane %v254_v47, 2 }
 0x17d   :  { %v256_v49 = vmax.f32 %v254_v47, %v255_v48 }
 0x17f   :  { %v257_v50 = vrot.slane %v256_v49, 1 }
 0x181   :  { %v258_v51 = vmax.f32 %v256_v49, %v257_v50 }
 0x183   :  { %v259_v52 = vsub.f32 %v247_v40, %v258_v51  ;;  %v260_v53 = vsub.f32 %v248_v42, %v258_v51 }
 0x185   :  { %v261_v54 = vmul.f32 1.442695, %v259_v52  ;;  %v263_v55 = vmul.f32 1.442695, %v260_v53 }
 0x187   :  { %334 = vpow2.f32 %v261_v54 }
 0x188   :  { %336 = vpow2.f32 %v263_v55 }
 0x194   :  { %v335_v56 = vpop.eup %334 }
 0x195   :  { %v337_v57 = vpop.eup %336  ;;  %v265_v58 = vsel %vm249_vm7, %v335_v56, 0.0 }
 0x196   :  { %v266_v59 = vsel %vm249_vm7, %v337_v57, 0.0 }
 0x197   :  { %v267_v60 = vadd.f32 %v266_v59, %v265_v58 }
 0x199   :  { %v268_v61 = vrot.slane %v267_v60, 4 }
 0x19b   :  { %v269_v62 = vadd.f32 %v268_v61, %v267_v60 }
 0x19d   :  { %v270_v63 = vrot.slane %v269_v62, 2 }
 0x19f   :  { %v271_v0 = vadd.f32 %v270_v63, %v269_v62 }
 0x1a1   :  { %v272_v1 = vrot.slane %v271_v0, 1 }
 0x1a3   :  { %v273_v2 = vadd.f32 %v272_v1, %v271_v0 }
 0x1a5   :  { %338 = vrcp.f32 %v273_v2 }
 0x1b2   :  { %v339_v3 = vpop.eup %338 }
 0x1b3   :  { %v275_v4 = vmul.f32 %v339_v3, %v335_v56  ;;  %v276_v6 = vmul.f32 %v339_v3, %v337_v57 }
 0x1b5   :  { %v277_v5 = vsel %vm249_vm7, %v275_v4, 0.0  ;;  %v280_v7 = vsel %vm249_vm7, %v276_v6, 0.0 }
 0x1b6   :  { %278 = vadd.xlane.f32.xlu1 %v277_v5 }
 0x1ba   :  { %281 = vadd.xlane.f32.xlu1 %v280_v7 }
 0x23f   :  { %v279_v8 = vpop.xlane.xlu1 %278 }
 0x240   :  { %284 = vst.msk [vmem:[%s427_s4] sm:$0xff] %vm283_vm8, %v279_v8 }
 0x243   :  { %v282_v9 = vpop.xlane.xlu1 %281 }
 0x244   :  { %285 = vst.msk [vmem:[%s427_s4 + $0x8] sm:$0xff] %vm283_vm8, %v282_v9 }

</bundles_post_ra>
